<compile_context>
chip_gen: v7x
topology: tpu7x:2x2x1
jax: 0.10.0
libtpu: 0.0.40
codegen_flags: <defaults>
</compile_context>

<pallas_src>
import jax
import jax.numpy as jnp
from jax.experimental import pallas as pl
from jax.experimental.pallas import tpu as pltpu

LANE = 128      # TPU vreg lane width
SUBLANE = 8     # TPU vreg sublane width (f32)


def _round_up(n, m):
    return ((n + m - 1) // m) * m


def _cdiv(a, b):
    return -(-a // b)


def make_actor_kernel(num_hidden):
    """Actor MLP kernel: num_hidden x (Linear+ReLU) then Linear+Tanh, all in VMEM."""

    def kernel(x_ref, *refs):
        out_ref = refs[-1]
        p = refs[:-1]
        # bf16 feeds the MXU at native rate; no-op if the caller already passed bf16.
        h = x_ref[...].astype(jnp.bfloat16)
        for l in range(num_hidden):
            w = p[2 * l][...]          # (in_pad, hid_pad) bf16
            b = p[2 * l + 1][...]      # (1, hid_pad) f32
            a = jnp.dot(h, w, preferred_element_type=jnp.float32) + b
            h = jnp.maximum(a, 0.0).astype(jnp.bfloat16)
        wr = p[-2][...]                # (hid_pad, output_dim) bf16  (output NOT lane-padded)
        br = p[-1][...]                # (1, output_dim) f32
        y = jnp.dot(h, wr, preferred_element_type=jnp.float32) + br
        out_ref[...] = jnp.tanh(y).astype(out_ref.dtype)   # narrow (output_dim-wide) store

    return kernel


def init_actor_params(key, input_dim, hidden_sizes, output_dim):
    """torch.nn.Linear-style uniform init; weights stored (in, out), i.e. transposed
    relative to torch's (out, in), so the kernel computes y = x @ W + b."""
    sizes = [input_dim] + list(hidden_sizes) + [output_dim]
    params = []
    for fan_in, fan_out in zip(sizes[:-1], sizes[1:]):
        key, kw, kb = jax.random.split(key, 3)
        bound = 1.0 / float(fan_in) ** 0.5
        w = jax.random.uniform(kw, (fan_in, fan_out), jnp.float32, -bound, bound)
        b = jax.random.uniform(kb, (fan_out,), jnp.float32, -bound, bound)
        params.append((w, b))
    return params


def pad_and_cast_params(params):
    """One-time load-time prep:
       * hidden layer OUTPUT dims (and matching next-layer input dims) padded to a
         multiple of 128 lanes, zero-filled,
       * the readout layer's output dim is left UN-padded (narrow output store),
       * weights cast to bf16, biases stay f32."""
    prepped = []
    prev_pad = None
    n_layers = len(params)
    for li, (w, b) in enumerate(params):
        fan_in, fan_out = w.shape
        in_pad = fan_in if li == 0 else prev_pad           # logical input_dim kept on layer 0
        out_pad = fan_out if li == n_layers - 1 else _round_up(fan_out, LANE)
        w_p = jnp.zeros((in_pad, out_pad), jnp.float32).at[:fan_in, :fan_out].set(w)
        b_p = jnp.zeros((1, out_pad), jnp.float32).at[0, :fan_out].set(b)
        prepped.extend([w_p.astype(jnp.bfloat16), b_p])
        prev_pad = out_pad
    return tuple(prepped)


def actor_forward(x, padded_params, input_dim, output_dim, tile_rows=2048):
    """Reshape like the PyTorch module, run the tiled/pipelined Pallas kernel,
    then slice off any batch padding.  x may be f32 or bf16."""
    x2d = x.reshape(-1, input_dim)
    batch = x2d.shape[0]

    # Sublane granularity depends on element width (8 for f32, 16 for bf16).
    itemsize = jnp.dtype(x2d.dtype).itemsize
    sub = SUBLANE * max(1, 4 // itemsize)

    # --- balanced batch tiling -------------------------------------------------
    num_tiles = _cdiv(batch, tile_rows)
    # v7x megacore: an even tile count >= 2 lets "parallel" split the batch across
    # both TensorCores.  Only force it once the batch is big enough to amortize the
    # extra grid step on single-TC chips (v5e/v6e).
    if num_tiles == 1 and batch > tile_rows // 2:
        num_tiles = 2
    if num_tiles > 1 and num_tiles % 2 == 1:
        num_tiles += 1
    tb = _round_up(_cdiv(batch, num_tiles), sub)
    batch_pad = num_tiles * tb
    if batch_pad != batch:
        x2d = jnp.pad(x2d, ((0, batch_pad - batch), (0, 0)))

    num_hidden = len(padded_params) // 2 - 1

    x_spec = pl.BlockSpec((tb, input_dim), lambda i: (i, 0))
    # Constant index_map -> weights/biases stay VMEM-resident across all batch
    # tiles; Buffered(1) -> no pointless double-buffer allocation for them.
    param_specs = [
        pl.BlockSpec(p.shape, lambda i: (0, 0), pipeline_mode=pl.Buffered(1))
        for p in padded_params
    ]
    # Narrow output block: last dim == full array dim, so < 128 lanes is legal.
    out_spec = pl.BlockSpec((tb, output_dim), lambda i: (i, 0))

    # Advisory cost estimate (helps XLA overlap this small custom call).
    flops = int(2 * batch_pad * sum(int(w.size) for w in padded_params[::2]))
    bytes_accessed = int(
        x2d.size * x2d.dtype.itemsize
        + sum(int(p.size) * p.dtype.itemsize for p in padded_params)
        + batch_pad * output_dim * 4
    )
    cost = pl.CostEstimate(
        flops=flops,
        transcendentals=int(batch_pad * output_dim),
        bytes_accessed=bytes_accessed,
    )

    out_full = pl.pallas_call(
        make_actor_kernel(num_hidden),
        out_shape=jax.ShapeDtypeStruct((batch_pad, output_dim), jnp.float32),
        grid=(num_tiles,),
        in_specs=[x_spec] + param_specs,
        out_specs=out_spec,
        compiler_params=pltpu.CompilerParams(
            dimension_semantics=("parallel",),       # megacore sharding on v7x
        ),
        cost_estimate=cost,
    )(x2d, *padded_params)

    if batch_pad != batch:
        out_full = out_full[:batch]
    return out_full


if __name__ == "__main__":
    input_dim = 16
    hidden_sizes = [32, 32]
    output_dim = 8

    key = jax.random.PRNGKey(0)
    key, kx = jax.random.split(key)
    # x has extra leading dims; forward() flattens to (-1, input_dim) -> (8, 16)
    x = jax.random.normal(kx, (2, 4, input_dim), dtype=jnp.float32)

    raw_params = init_actor_params(key, input_dim, hidden_sizes, output_dim)
    params = pad_and_cast_params(raw_params)   # done once at "load" time

    out = actor_forward(x, params, input_dim, output_dim)
    out = jax.block_until_ready(out)

    # Pure-JAX f32 reference for correctness.
    h = x.reshape(-1, input_dim)
    for w, b in raw_params[:-1]:
        h = jnp.maximum(h @ w + b, 0.0)
    wr, br = raw_params[-1]
    ref = jnp.tanh(h @ wr + br)

    assert out.shape == (8, output_dim)
    assert bool(jnp.all(jnp.abs(out) <= 1.0))
    assert bool(jnp.max(jnp.abs(out - ref)) < 5e-2)   # bf16 matmul tolerance

    # TODO(synk): optimizer (Adam) / device placement from the torch module are
    # training-state concerns, not part of the forward pass, and are not ported.

    print("KERNEL_OK")
</pallas_src>

<mosaic_0001>
module attributes {stable_mosaic.version = 11 : i64} {
  func.func @kernel(%arg0: i32, %arg1: memref<8x16xf32, #tpu.memory_space<vmem>>, %arg2: memref<16x128xbf16, #tpu.memory_space<vmem>>, %arg3: memref<1x128xf32, #tpu.memory_space<vmem>>, %arg4: memref<128x128xbf16, #tpu.memory_space<vmem>>, %arg5: memref<1x128xf32, #tpu.memory_space<vmem>>, %arg6: memref<128x8xbf16, #tpu.memory_space<vmem>>, %arg7: memref<1x8xf32, #tpu.memory_space<vmem>>, %arg8: memref<8x8xf32, #tpu.memory_space<vmem>>) attributes {dimension_semantics = [#tpu.dimension_semantics<parallel>], iteration_bounds = array<i64: 1>, scalar_prefetch = 0 : i64, scratch_operands = 0 : i64, tpu.core_type = #tpu.core_type<tc>, window_params = [{transform_indices = @transform_0, window_bounds = array<i64: 8, 16>}, {pipeline_mode = #tpu.pipeline_mode<synchronous>, transform_indices = @transform_1, window_bounds = array<i64: 16, 128>}, {pipeline_mode = #tpu.pipeline_mode<synchronous>, transform_indices = @transform_2, window_bounds = array<i64: 1, 128>}, {pipeline_mode = #tpu.pipeline_mode<synchronous>, transform_indices = @transform_3, window_bounds = array<i64: 128, 128>}, {pipeline_mode = #tpu.pipeline_mode<synchronous>, transform_indices = @transform_4, window_bounds = array<i64: 1, 128>}, {pipeline_mode = #tpu.pipeline_mode<synchronous>, transform_indices = @transform_5, window_bounds = array<i64: 128, 8>}, {pipeline_mode = #tpu.pipeline_mode<synchronous>, transform_indices = @transform_6, window_bounds = array<i64: 1, 8>}, {transform_indices = @transform_7, window_bounds = array<i64: 8, 8>}]} {
    %c0 = arith.constant 0 : index
    %c0_0 = arith.constant 0 : index
    %0 = vector.load %arg1[%c0, %c0_0] : memref<8x16xf32, #tpu.memory_space<vmem>>, vector<8x16xf32>
    %1 = arith.truncf %0 : vector<8x16xf32> to vector<8x16xbf16>
    %c0_1 = arith.constant 0 : index
    %c0_2 = arith.constant 0 : index
    %2 = vector.load %arg2[%c0_1, %c0_2] : memref<16x128xbf16, #tpu.memory_space<vmem>>, vector<16x128xbf16>
    %c0_3 = arith.constant 0 : index
    %c0_4 = arith.constant 0 : index
    %3 = vector.load %arg3[%c0_3, %c0_4] : memref<1x128xf32, #tpu.memory_space<vmem>>, vector<1x128xf32>
    %cst = arith.constant dense<0.000000e+00> : vector<8x128xf32>
    %4 = tpu.matmul %1, %2, %cst {dimension_numbers = #tpu.dot_dimension_numbers<[1], [0], [0], [1], [0, 0, 1, 1], [], []>} : vector<8x16xbf16>, vector<16x128xbf16>, vector<8x128xf32> -> vector<8x128xf32>
    %5 = vector.broadcast %3 : vector<1x128xf32> to vector<8x128xf32>
    %6 = arith.addf %4, %5 : vector<8x128xf32>
    %cst_5 = arith.constant 0.000000e+00 : f32
    %7 = vector.broadcast %cst_5 : f32 to vector<8x128xf32>
    %8 = arith.maximumf %6, %7 : vector<8x128xf32>
    %9 = arith.truncf %8 : vector<8x128xf32> to vector<8x128xbf16>
    %c0_6 = arith.constant 0 : index
    %c0_7 = arith.constant 0 : index
    %10 = vector.load %arg4[%c0_6, %c0_7] : memref<128x128xbf16, #tpu.memory_space<vmem>>, vector<128x128xbf16>
    %c0_8 = arith.constant 0 : index
    %c0_9 = arith.constant 0 : index
    %11 = vector.load %arg5[%c0_8, %c0_9] : memref<1x128xf32, #tpu.memory_space<vmem>>, vector<1x128xf32>
    %cst_10 = arith.constant dense<0.000000e+00> : vector<8x128xf32>
    %12 = tpu.matmul %9, %10, %cst_10 {dimension_numbers = #tpu.dot_dimension_numbers<[1], [0], [0], [1], [0, 0, 1, 1], [], []>} : vector<8x128xbf16>, vector<128x128xbf16>, vector<8x128xf32> -> vector<8x128xf32>
    %13 = vector.broadcast %11 : vector<1x128xf32> to vector<8x128xf32>
    %14 = arith.addf %12, %13 : vector<8x128xf32>
    %cst_11 = arith.constant 0.000000e+00 : f32
    %15 = vector.broadcast %cst_11 : f32 to vector<8x128xf32>
    %16 = arith.maximumf %14, %15 : vector<8x128xf32>
    %17 = arith.truncf %16 : vector<8x128xf32> to vector<8x128xbf16>
    %c0_12 = arith.constant 0 : index
    %c0_13 = arith.constant 0 : index
    %18 = vector.load %arg6[%c0_12, %c0_13] : memref<128x8xbf16, #tpu.memory_space<vmem>>, vector<128x8xbf16>
    %c0_14 = arith.constant 0 : index
    %c0_15 = arith.constant 0 : index
    %19 = vector.load %arg7[%c0_14, %c0_15] : memref<1x8xf32, #tpu.memory_space<vmem>>, vector<1x8xf32>
    %cst_16 = arith.constant dense<0.000000e+00> : vector<8x8xf32>
    %20 = tpu.matmul %17, %18, %cst_16 {dimension_numbers = #tpu.dot_dimension_numbers<[1], [0], [0], [1], [0, 0, 1, 1], [], []>} : vector<8x128xbf16>, vector<128x8xbf16>, vector<8x8xf32> -> vector<8x8xf32>
    %21 = vector.broadcast %19 : vector<1x8xf32> to vector<8x8xf32>
    %22 = arith.addf %20, %21 : vector<8x8xf32>
    %23 = math.tanh %22 : vector<8x8xf32>
    %c0_17 = arith.constant 0 : index
    %c0_18 = arith.constant 0 : index
    %24 = vector.load %arg8[%c0_17, %c0_18] : memref<8x8xf32, #tpu.memory_space<vmem>>, vector<8x8xf32>
    tpu.vector_store %arg8[%c0_17, %c0_18], %23 {strides = array<i32>} : memref<8x8xf32, #tpu.memory_space<vmem>>, vector<8x8xf32>,
    return
  }
  func.func @transform_0(%arg0: i32) -> (i32, i32) {
    %c0_i32 = arith.constant 0 : i32
    %c0_i32_0 = arith.constant 0 : i32
    return %arg0, %c0_i32 : i32, i32
  }
  func.func @transform_1(%arg0: i32) -> (i32, i32) {
    %c0_i32 = arith.constant 0 : i32
    %c0_i32_0 = arith.constant 0 : i32
    %c0_i32_1 = arith.constant 0 : i32
    return %c0_i32, %c0_i32_0 : i32, i32
  }
  func.func @transform_2(%arg0: i32) -> (i32, i32) {
    %c0_i32 = arith.constant 0 : i32
    %c0_i32_0 = arith.constant 0 : i32
    %c0_i32_1 = arith.constant 0 : i32
    return %c0_i32, %c0_i32_0 : i32, i32
  }
  func.func @transform_3(%arg0: i32) -> (i32, i32) {
    %c0_i32 = arith.constant 0 : i32
    %c0_i32_0 = arith.constant 0 : i32
    %c0_i32_1 = arith.constant 0 : i32
    return %c0_i32, %c0_i32_0 : i32, i32
  }
  func.func @transform_4(%arg0: i32) -> (i32, i32) {
    %c0_i32 = arith.constant 0 : i32
    %c0_i32_0 = arith.constant 0 : i32
    %c0_i32_1 = arith.constant 0 : i32
    return %c0_i32, %c0_i32_0 : i32, i32
  }
  func.func @transform_5(%arg0: i32) -> (i32, i32) {
    %c0_i32 = arith.constant 0 : i32
    %c0_i32_0 = arith.constant 0 : i32
    %c0_i32_1 = arith.constant 0 : i32
    return %c0_i32, %c0_i32_0 : i32, i32
  }
  func.func @transform_6(%arg0: i32) -> (i32, i32) {
    %c0_i32 = arith.constant 0 : i32
    %c0_i32_0 = arith.constant 0 : i32
    %c0_i32_1 = arith.constant 0 : i32
    return %c0_i32, %c0_i32_0 : i32, i32
  }
  func.func @transform_7(%arg0: i32) -> (i32, i32) {
    %c0_i32 = arith.constant 0 : i32
    %c0_i32_0 = arith.constant 0 : i32
    return %arg0, %c0_i32 : i32, i32
  }
}

</mosaic_0001>

<bundles_post_ra>
// kernel: tpu_custom_call.1
= control target key start
LH: loop header
LB: loop body
LE: loop exit
PB: predicated region body
PF: predicated region fallthrough
CT: control target
= control target key end

     0   :  { %12 = vsyncpa [#allocation3], 0  ;;  %s657_s0 = inlined_call_operand.vmem [shape: f32[8,16], index: 0, kind: input, shape index: {}]   ;;  %s658_s1 = inlined_call_operand.hbm [shape: bf16[16,128], index: 1, kind: input, shape index: {}]   ;;  %s659_s2 = inlined_call_operand.vmem [shape: f32[1,128], index: 2, kind: input, shape index: {}]   ;;  %s660_s3 = inlined_call_operand.vmem [shape: bf16[128,128], index: 3, kind: input, shape index: {}]   ;;  %s661_s4 = inlined_call_operand.vmem [shape: f32[1,128], index: 4, kind: input, shape index: {}]   ;;  %s662_s5 = inlined_call_operand.vmem [shape: bf16[128,8], index: 5, kind: input, shape index: {}]   ;;  %s663_s6 = inlined_call_operand.vmem [shape: f32[1,8], index: 6, kind: input, shape index: {}]   ;;  %s664_s7 = inlined_call_operand.hbm [shape: f32[8,8], index: 7, kind: output, shape index: {}]  }
   0x1   :  { %13 = vsyncpa [#allocation4], 0  ;;  %s507_s24 = smov [#allocation2]   ;;  %s459_s28 = scalar_lea.hbm %s658_s1, 128 }
   0x2   :  { %s21_s25 = sshll.u32 %s507_s24, 4  ;;  %p460_p0 = scmp.ne.s32.totalorder %s658_s1, %s459_s28  ;;  %s22_s25 = int_to_ptr.vmem [resolvable:$true] %s21_s25 }
   0x3   :  { %p463_p1 = scmp.lt.u32.totalorder %s459_s28, %s658_s1 }
   0x5   :  { %p465_p2 = pnand %p463_p1, %p460_p0 }
   0x7   :  { %468 = shalt.err (!%p465_p2)
}
   0x8   :  { %s469_s10 = scalar_lea.vmem %s22_s25, 128  ;;  %p474_p4 = scmp.lt.s32.totalorder %s22_s25, %s22_s25 }
   0x9   :  { %p470_p3 = scmp.ne.s32.totalorder %s22_s25, %s469_s10  ;;  %p475_p5 = scmp.lt.s32.totalorder %s469_s10, %s469_s10 }
   0xb   :  { %p476_p6 = por %p475_p5, %p474_p4 }
   0xd   :  { %p477_p7 = pnand %p476_p6, %p470_p3 }
   0xf   :  { %480 = shalt.err (!%p477_p7)
}
  0x10   :  { %s508_s11 = smov 64   ;;  %s509_s12 = smov 4  }
  0x11   :  { %27 = dma.hbm_to_vmem [thread:$0]  %s658_s1, 128, %s22_s25, [#allocation3], %s508_s11, %s508_s11, %s509_s12  }
  0x12   :  { %503 = dma.done.wait [#allocation3], 128  }
  0x13   :  { %504 = vsyncadd [#allocation3], 4294967168  ;;  %v510_v0 = vmov 0.0   ;;  %vm511_vm0 = vmmov 0   ;;  %v440_v1 = vld [vmem:[#allocation2] sm:$0xff]   ;;  %vm59_vm1 = vcmask 130048  }
  0x14   :  { %388 = vmatprep.subr.bf16.mxu0 %v510_v0  ;;  %390 = vmatprep.mubr.msk.bf16.mxu0 %vm511_vm0, %v510_v0  ;;  %v42_v2 = vld [vmem:[%s657_s0] sm:$0xff]  ;;  %v442_v5 = vld [vmem:[%s660_s3 + $0x8] sm:$0xff]   ;;  %v443_v6 = vld [vmem:[%s660_s3 + $0x10] sm:$0xff]   ;;  %vm330_vm2 = vcmask 64512  }
  0x15   :  { %394 = vmatprep.subr.bf16.mxu1 %v510_v0  ;;  %410 = vmatprep.mubr.msk.bf16.mxu1 %vm511_vm0, %v510_v0  ;;  %v43_v3 = vpack.c.bf16 %v42_v2, %v42_v2  ;;  %v441_v4 = vld [vmem:[%s660_s3] sm:$0xff]   ;;  %v444_v7 = vld [vmem:[%s660_s3 + $0x18] sm:$0xff]   ;;  %v446_v9 = vld [vmem:[%s660_s3 + $0x28] sm:$0xff]  }
  0x16   :  { %389 = vmatpush3.bf16.msra.mxu0 %v440_v1  ;;  %395 = vmatpush3.bf16.msra.mxu1 %v441_v4  ;;  %v445_v8 = vld [vmem:[%s660_s3 + $0x20] sm:$0xff]   ;;  %v447_v10 = vld [vmem:[%s660_s3 + $0x30] sm:$0xff]   ;;  %v448_v11 = vld [vmem:[%s660_s3 + $0x38] sm:$0xff]  }
  0x17   :  { %414 = vmatprep.subr.bf16.mxu0 %v510_v0  ;;  %396 = vmatprep.subr.bf16.mxu1 %v510_v0  ;;  %v449_v12 = vld [vmem:[%s662_s5] sm:$0xff]   ;;  %v450_v13 = vld [vmem:[%s662_s5 + $0x8] sm:$0xff]   ;;  %v451_v14 = vld [vmem:[%s662_s5 + $0x10] sm:$0xff]  }
  0x18   :  { %v452_v15 = vld [vmem:[%s662_s5 + $0x18] sm:$0xff]   ;;  %v453_v16 = vld [vmem:[%s662_s5 + $0x20] sm:$0xff]   ;;  %v454_v17 = vld [vmem:[%s662_s5 + $0x28] sm:$0xff]  }
  0x19   :  { %391 = vmatmul.mubr.msk.bf16.vlgmr.msra.gmra.mrb[0].mxu0 %vm59_vm1, %v43_v3  ;;  %v347_v18 = vld [vmem:[%s659_s2] ss:$0 sm:$0xff]  ;;  %v455_v26 = vld [vmem:[%s662_s5 + $0x30] sm:$0xff]   ;;  %v456_v27 = vld [vmem:[%s662_s5 + $0x38] sm:$0xff]   ;;  %s512_s5 = smov [#allocation5]  }
  0x1a   :  { %430 = vmatprep.mubr.msk.bf16.mxu0 %vm511_vm0, %v510_v0  ;;  %397 = vmatpush3.bf16.msra.mxu1 %v442_v5  ;;  %v350_v28 = vld [vmem:[%s661_s4] ss:$0 sm:$0xff]  ;;  %s338_s4 = sshll.u32 %s512_s5, 4  ;;  %s339_s4 = int_to_ptr.vmem [resolvable:$true] %s338_s4 }
  0x1b   :  { %398 = vmatprep.subr.bf16.mxu1 %v510_v0  ;;  %415 = vmatpush3.bf16.msra.mxu0 %v449_v12  ;;  %v359_v36 = vld [vmem:[%s663_s6] ss:$0 sm:$0xff]  ;;  %s481_s26 = scalar_lea.vmem %s339_s4, 128  ;;  %p486_p9 = scmp.lt.s32.totalorder %s339_s4, %s339_s4 }
  0x1c   :  { %416 = vmatprep.subr.bf16.mxu0 %v510_v0  ;;  %p482_p8 = scmp.ne.s32.totalorder %s339_s4, %s481_s26  ;;  %p487_p10 = scmp.lt.s32.totalorder %s481_s26, %s481_s26 }
  0x1e   :  { %399 = vmatpush3.bf16.msra.mxu1 %v443_v6  ;;  %p488_p11 = por %p487_p10, %p486_p9 }
  0x1f   :  { %400 = vmatprep.subr.bf16.mxu1 %v510_v0  ;;  %417 = vmatpush3.bf16.msra.mxu0 %v450_v13 }
  0x20   :  { %418 = vmatprep.subr.bf16.mxu0 %v510_v0  ;;  %p489_p12 = pnand %p488_p11, %p482_p8 }
  0x22   :  { %401 = vmatpush3.bf16.msra.mxu1 %v444_v7 }
  0x23   :  { %402 = vmatprep.subr.bf16.mxu1 %v510_v0  ;;  %419 = vmatpush3.bf16.msra.mxu0 %v451_v14 }
  0x24   :  { %420 = vmatprep.subr.bf16.mxu0 %v510_v0 }
  0x26   :  { %403 = vmatpush3.bf16.msra.mxu1 %v445_v8 }
  0x27   :  { %404 = vmatprep.subr.bf16.mxu1 %v510_v0  ;;  %421 = vmatpush3.bf16.msra.mxu0 %v452_v15 }
  0x28   :  { %422 = vmatprep.subr.bf16.mxu0 %v510_v0 }
  0x2a   :  { %405 = vmatpush3.bf16.msra.mxu1 %v446_v9 }
  0x2b   :  { %406 = vmatprep.subr.bf16.mxu1 %v510_v0  ;;  %423 = vmatpush3.bf16.msra.mxu0 %v453_v16 }
  0x2c   :  { %424 = vmatprep.subr.bf16.mxu0 %v510_v0 }
  0x2e   :  { %407 = vmatpush3.bf16.msra.mxu1 %v447_v10 }
  0x2f   :  { %408 = vmatprep.subr.bf16.mxu1 %v510_v0  ;;  %425 = vmatpush3.bf16.msra.mxu0 %v454_v17 }
  0x30   :  { %426 = vmatprep.subr.bf16.mxu0 %v510_v0 }
  0x32   :  { %409 = vmatpush3.bf16.msra.mxu1 %v448_v11 }
  0x33   :  { %427 = vmatpush3.bf16.msra.mxu0 %v455_v26 }
  0x34   :  { %428 = vmatprep.subr.bf16.mxu0 %v510_v0 }
  0x37   :  { %429 = vmatpush3.bf16.msra.mxu0 %v456_v27 }
  0xec   :  { %v97_v19 = vpop.f32.mrb[0].mxu0 }
  0xed   :  { %v98_v20 = vadd.f32 %v347_v18, %v97_v19  ;;  %v392_v21 = vpop.f32.mrb[1].mxu0 }
  0xee   :  { %v100_v22 = vpop.f32.mrb[2].mxu0 }
  0xef   :  { %v103_v23 = vmax.f32 %v98_v20, 0.0  ;;  %v393_v24 = vpop.f32.mrb[3].mxu0 }
  0xf1   :  { %v104_v25 = vpack.c.bf16 %v103_v23, %v103_v23 }
  0xf3   :  { %411 = vmatmul.mubr.bf16.vlgmr.msra.gmra.mrb[0].mxu1 %v104_v25 }
 0x1c6   :  { %v210_v29 = vpop.f32.mrb[0].mxu1 }
 0x1c7   :  { %v211_v30 = vadd.f32 %v350_v28, %v210_v29  ;;  %v412_v31 = vpop.f32.mrb[1].mxu1 }
 0x1c8   :  { %v213_v32 = vpop.f32.mrb[2].mxu1 }
 0x1c9   :  { %v216_v33 = vmax.f32 %v211_v30, 0.0  ;;  %v413_v34 = vpop.f32.mrb[3].mxu1 }
 0x1cb   :  { %v217_v35 = vpack.c.bf16 %v216_v33, %v216_v33 }
 0x1cd   :  { %431 = vmatmul.mubr.bf16.vlgmr.msra.gmra.mrb[4].mxu0 %v217_v35 }
 0x2a0   :  { %v323_v37 = vpop.f32.mrb[4].mxu0 }
 0x2a1   :  { %v324_v38 = vadd.f32 %v359_v36, %v323_v37  ;;  %v432_v39 = vpop.f32.mrb[5].mxu0 }
 0x2a2   :  { %v326_v40 = vpop.f32.mrb[6].mxu0 }
 0x2a3   :  { %457 = vtanh.f32 %v324_v38  ;;  %v433_v41 = vpop.f32.mrb[7].mxu0 }
 0x2ad   :  { %v458_v42 = vpop.eup %457 }
 0x2ae   :  { %331 = vst.msk [vmem:[#allocation5] sm:$0xff] %vm330_vm2, %v458_v42 }
 0x2af   :  { %492 = shalt.err (!%p489_p12)
}
 0x2b0   :  { %s493_s28 = scalar_lea.hbm %s664_s7, 128 }
 0x2b1   :  { %p494_p13 = scmp.ne.s32.totalorder %s664_s7, %s493_s28  ;;  %p497_p0 = scmp.lt.u32.totalorder %s493_s28, %s664_s7 }
 0x2b3   :  { %p499_p1 = pnand %p497_p0, %p494_p13 }
 0x2b5   :  { %502 = shalt.err (!%p499_p1)
}
 0x2b6   :  { %341 = dma.vmem_to_hbm [thread:$0]  %s339_s4, 128, %s664_s7, [#allocation4]  }
 0x2b7   :  { %505 = dma.done.wait [#allocation4], 128  }
 0x2b8   :  { %506 = vsyncadd [#allocation4], 4294967168 }
 0x2b9   :  { %345 = vsyncpa [#allocation3], 1 }
 0x2ba   :  { %346 = vsyncpa [#allocation4], 1 }

</bundles_post_ra>
